<compile_context>
chip_gen: v5e
topology: v5e:2x2
jax: 0.10.0
libtpu: 0.0.40
codegen_flags: <defaults>
</compile_context>

<pallas_src>
import jax
import jax.numpy as jnp
from jax import lax
from jax.experimental import pallas as pl
from jax.experimental.pallas import tpu as pltpu

_COLS = 512              # lane-dense width of the flattened recon/x slab
_MAX_BLOCK_ROWS = 2048   # 2048 x 512 f32 = 4 MiB per input block (v7x-safe;
                         # sweep larger on v5e/v6e if desired)
_NUM_CORES = 2           # leading "parallel" grid axis (v7x dual TensorCore)


def _build_kernel(rows_total, block_rows, blocks_per_core, acc_rows, needs_mask):
    def kernel(mu_ref, logvar_ref, recon_ref, x_ref,
               kld_ref, bce_ref, acc_ref):
        c = pl.program_id(0)   # core split (parallel)
        i = pl.program_id(1)   # streaming reduction axis (arbitrary)

        @pl.when(i == 0)
        def _init():
            acc_ref[...] = jnp.zeros_like(acc_ref)

        diff = recon_ref[...].astype(jnp.float32) - x_ref[...].astype(jnp.float32)
        if needs_mask:
            # Zero rows whose *logical* global row index is past the real data.
            # Covers both the ragged last block and any fully-out-of-range
            # (clamped, duplicated) block a core is assigned when blocks do not
            # split evenly.  Mask is applied BEFORE accumulation.
            logical_block = c * blocks_per_core + i
            row = lax.broadcasted_iota(jnp.int32, diff.shape, 0)
            global_row = logical_block * block_rows + row
            diff = jnp.where(global_row < rows_total, diff, 0.0)
        dd = diff * diff
        # Lane-dense accumulation: fold sublane groups with full-width VALU
        # adds; keep the cross-lane reduce for the finalize step only.
        if block_rows == acc_rows:
            acc_ref[...] += dd
        else:
            acc_ref[...] += dd.reshape(block_rows // acc_rows, acc_rows, _COLS).sum(axis=0)

        @pl.when(i == blocks_per_core - 1)
        def _finalize():
            mu = mu_ref[...].astype(jnp.float32)
            logvar = logvar_ref[...].astype(jnp.float32)
            # KLD = -0.5 * sum(1 + logvar - mu^2 - exp(logvar)); tiny, computed
            # redundantly per core, the wrapper reads core 0's copy.
            kld_ref[0, 0] = -0.5 * jnp.sum(1.0 + logvar - mu * mu - jnp.exp(logvar))
            bce_ref[0, 0] = jnp.sum(acc_ref[...])   # un-normalized partial SSE

    return kernel


def _flatten_small(a):
    """mu / logvar: tiny latent tensors, passed as one full block."""
    if a.ndim >= 2:
        return a.reshape(-1, a.shape[-1])
    return a.reshape(1, -1)


def _to_slab(a):
    """Flatten to a lane-dense (rows, _COLS) slab with minimal padding.

    Padding (a full-array HBM copy) only happens when numel % _COLS != 0;
    there is never padding to a multiple of the *block* size — ragged tails
    are masked inside the kernel instead.
    """
    n = a.size
    flat = a.reshape(-1)
    n_slab = pl.cdiv(n, _COLS) * _COLS
    if n_slab != n:
        # TODO(synk): a fully copy-free ragged tail would need 1-D blocks /
        # in-kernel handling of a partial last row; not implemented.
        flat = jnp.pad(flat, (0, n_slab - n))
    return flat.reshape(n_slab // _COLS, _COLS)


def vae_loss(mu, logvar, recon_x, x, *, max_block_rows=_MAX_BLOCK_ROWS):
    n_true = recon_x.size
    assert x.size == n_true, "recon_x and x must have the same number of elements"

    mu2 = _flatten_small(mu)
    logvar2 = _flatten_small(logvar)
    if (mu2.size + logvar2.size) * 4 > (8 << 20):
        raise ValueError("mu/logvar too large for single-block VMEM staging")

    recon2 = _to_slab(recon_x)
    x2 = _to_slab(x)
    rows_total = recon2.shape[0]

    # Sublane granularity of the gridded inputs: 8 rows for 4-byte dtypes,
    # 16 for 2-byte (bf16), 32 for 1-byte.
    sub = max(8, 32 // recon2.dtype.itemsize, 32 // x2.dtype.itemsize)
    mbr = max(sub, (max_block_rows // sub) * sub)

    if rows_total >= sub:
        block_rows = min(mbr, (rows_total // sub) * sub)
    else:
        block_rows = rows_total            # full-dim block (tiny input)
    acc_rows = 8 if block_rows % 8 == 0 else block_rows

    total_blocks = pl.cdiv(rows_total, block_rows)
    n_cores = _NUM_CORES if total_blocks >= _NUM_CORES else 1
    blocks_per_core = pl.cdiv(total_blocks, n_cores)
    covered_rows = n_cores * blocks_per_core * block_rows
    needs_mask = covered_rows > rows_total

    def stream_map(c, i):
        # Clamp so a core's trailing (fully masked) block never indexes past
        # the array; correctness comes from the in-kernel logical-index mask.
        return (jnp.minimum(c * blocks_per_core + i, total_blocks - 1), 0)

    # VMEM budget: 2 inputs x 2 pipeline buffers + in-kernel f32 temporaries
    # (diff / dd chain) + headroom.
    in_block_bytes = block_rows * _COLS * (recon2.dtype.itemsize + x2.dtype.itemsize)
    f32_block_bytes = block_rows * _COLS * 4
    vmem_limit = int(2 * in_block_bytes + 3 * f32_block_bytes + (4 << 20))

    scalar_shape = jax.ShapeDtypeStruct((n_cores, 1), jnp.float32)
    scalar_spec = pl.BlockSpec((1, 1), lambda c, i: (c, 0),
                               memory_space=pltpu.MemorySpace.SMEM)

    cost = pl.CostEstimate(
        flops=int(3 * n_true + 6 * mu.size),
        transcendentals=int(mu.size),
        bytes_accessed=int(recon_x.nbytes + x.nbytes + mu.nbytes + logvar.nbytes
                           + 2 * 4 * n_cores),
    )

    kld_part, bce_part = pl.pallas_call(
        _build_kernel(rows_total, block_rows, blocks_per_core, acc_rows, needs_mask),
        out_shape=(scalar_shape, scalar_shape),
        grid=(n_cores, blocks_per_core),
        in_specs=[
            pl.BlockSpec(mu2.shape, lambda c, i: (0, 0)),      # one full block
            pl.BlockSpec(logvar2.shape, lambda c, i: (0, 0)),  # one full block
            pl.BlockSpec((block_rows, _COLS), stream_map),
            pl.BlockSpec((block_rows, _COLS), stream_map),
        ],
        out_specs=(scalar_spec, scalar_spec),
        scratch_shapes=[
            pltpu.VMEM((acc_rows, _COLS), jnp.float32),        # lane-dense partials
        ],
        compiler_params=pltpu.CompilerParams(
            dimension_semantics=("parallel", "arbitrary"),
            vmem_limit_bytes=vmem_limit,
        ),
        cost_estimate=cost,
    )(mu2, logvar2, recon2, x2)

    # Tiny scalar combine (per-core partial sums -> mean) in plain JAX.
    kld = kld_part[0, 0]
    bce = jnp.sum(bce_part) * jnp.float32(1.0 / n_true)   # MSELoss(reduction='mean')
    elbo = kld + bce
    return elbo, kld, bce


if __name__ == "__main__":
    key = jax.random.PRNGKey(0)
    k1, k2, k3, k4 = jax.random.split(key, 4)

    B, Z = 2, 32           # latent: mu / logvar
    C, H, W = 4, 16, 16    # reconstruction: NCHW

    mu = jax.random.normal(k1, (B, Z), dtype=jnp.float32)
    logvar = 0.1 * jax.random.normal(k2, (B, Z), dtype=jnp.float32)
    recon_x = jax.random.normal(k3, (B, C, H, W), dtype=jnp.float32)
    x = jax.random.normal(k4, (B, C, H, W), dtype=jnp.float32)

    def ref_loss(mu_, logvar_, r_, x_):
        kld_ = -0.5 * jnp.sum(1.0 + logvar_ - mu_**2 - jnp.exp(logvar_))
        bce_ = jnp.mean((r_ - x_) ** 2)
        return kld_ + bce_, kld_, bce_

    elbo, kld, bce = vae_loss(mu, logvar, recon_x, x)
    jax.block_until_ready((elbo, kld, bce))
    e_r, k_r, b_r = ref_loss(mu, logvar, recon_x, x)
    assert jnp.allclose(kld, k_r, rtol=1e-5, atol=1e-5)
    assert jnp.allclose(bce, b_r, rtol=1e-5, atol=1e-5)
    assert jnp.allclose(elbo, e_r, rtol=1e-5, atol=1e-5)

    # Extra small self-checks: ragged (non-multiple-of-512) pad path.
    k5, k6 = jax.random.split(k4)
    r_rag = jax.random.normal(k5, (2, 3, 17, 19), dtype=jnp.float32)
    x_rag = jax.random.normal(k6, (2, 3, 17, 19), dtype=jnp.float32)
    e2, _, b2 = vae_loss(mu, logvar, r_rag, x_rag)
    e2r, _, b2r = ref_loss(mu, logvar, r_rag, x_rag)
    assert jnp.allclose(b2, b2r, rtol=1e-5, atol=1e-5)
    assert jnp.allclose(e2, e2r, rtol=1e-5, atol=1e-5)

    # Multi-block / dual-core / tail-mask path (forced small block size).
    k7, k8 = jax.random.split(k5)
    r_big = jax.random.normal(k7, (2, 4, 40, 64), dtype=jnp.float32)
    x_big = jax.random.normal(k8, (2, 4, 40, 64), dtype=jnp.float32)
    e3, _, b3 = vae_loss(mu, logvar, r_big, x_big, max_block_rows=16)
    e3r, _, b3r = ref_loss(mu, logvar, r_big, x_big)
    assert jnp.allclose(b3, b3r, rtol=1e-5, atol=1e-5)
    assert jnp.allclose(e3, e3r, rtol=1e-5, atol=1e-5)

    print("KERNEL_OK")
</pallas_src>

<mosaic_0001>
module attributes {stable_mosaic.version = 11 : i64} {
  func.func @kernel(%arg0: i32, %arg1: i32, %arg2: memref<2x32xf32, #tpu.memory_space<vmem>>, %arg3: memref<2x32xf32, #tpu.memory_space<vmem>>, %arg4: memref<4x512xf32, #tpu.memory_space<vmem>>, %arg5: memref<4x512xf32, #tpu.memory_space<vmem>>, %arg6: memref<1x1xf32, #tpu.memory_space<smem>>, %arg7: memref<1x1xf32, #tpu.memory_space<smem>>, %arg8: memref<4x512xf32, #tpu.memory_space<vmem>>) attributes {dimension_semantics = [#tpu.dimension_semantics<parallel>, #tpu.dimension_semantics<arbitrary>], iteration_bounds = array<i64: 1, 1>, scalar_prefetch = 0 : i64, scratch_operands = 1 : i64, tpu.core_type = #tpu.core_type<tc>, window_params = [{pipeline_mode = #tpu.pipeline_mode<synchronous>, transform_indices = @transform_0, window_bounds = array<i64: 2, 32>}, {pipeline_mode = #tpu.pipeline_mode<synchronous>, transform_indices = @transform_1, window_bounds = array<i64: 2, 32>}, {transform_indices = @transform_2, window_bounds = array<i64: 4, 512>}, {transform_indices = @transform_3, window_bounds = array<i64: 4, 512>}, {transform_indices = @transform_4, window_bounds = array<i64: 1, 1>}, {transform_indices = @transform_5, window_bounds = array<i64: 1, 1>}]} {
    %c0_i32 = arith.constant 0 : i32
    %0 = arith.cmpi eq, %arg1, %c0_i32 : i32
    %1 = arith.extui %0 : i1 to i32
    %c0_i32_0 = arith.constant 0 : i32
    %2 = arith.cmpi ne, %1, %c0_i32_0 : i32
    scf.if %2 {
      %cst = arith.constant 0.000000e+00 : f32
      %13 = vector.broadcast %cst : f32 to vector<4x512xf32>
      %c0_10 = arith.constant 0 : index
      %c0_11 = arith.constant 0 : index
      %14 = vector.load %arg8[%c0_10, %c0_11] : memref<4x512xf32, #tpu.memory_space<vmem>>, vector<4x512xf32>
      tpu.vector_store %arg8[%c0_10, %c0_11], %13 {strides = array<i32>} : memref<4x512xf32, #tpu.memory_space<vmem>>, vector<4x512xf32>,
    } else {
    }
    %c0 = arith.constant 0 : index
    %c0_1 = arith.constant 0 : index
    %3 = vector.load %arg4[%c0, %c0_1] : memref<4x512xf32, #tpu.memory_space<vmem>>, vector<4x512xf32>
    %c0_2 = arith.constant 0 : index
    %c0_3 = arith.constant 0 : index
    %4 = vector.load %arg5[%c0_2, %c0_3] : memref<4x512xf32, #tpu.memory_space<vmem>>, vector<4x512xf32>
    %5 = arith.subf %3, %4 : vector<4x512xf32>
    %6 = arith.mulf %5, %5 : vector<4x512xf32>
    %c0_4 = arith.constant 0 : index
    %c0_5 = arith.constant 0 : index
    %7 = vector.load %arg8[%c0_4, %c0_5] : memref<4x512xf32, #tpu.memory_space<vmem>>, vector<4x512xf32>
    %8 = arith.addf %7, %6 : vector<4x512xf32>
    %c0_6 = arith.constant 0 : index
    %c0_7 = arith.constant 0 : index
    %9 = vector.load %arg8[%c0_6, %c0_7] : memref<4x512xf32, #tpu.memory_space<vmem>>, vector<4x512xf32>
    tpu.vector_store %arg8[%c0_6, %c0_7], %8 {strides = array<i32>} : memref<4x512xf32, #tpu.memory_space<vmem>>, vector<4x512xf32>,
    %c0_i32_8 = arith.constant 0 : i32
    %10 = arith.cmpi eq, %arg1, %c0_i32_8 : i32
    %11 = arith.extui %10 : i1 to i32
    %c0_i32_9 = arith.constant 0 : i32
    %12 = arith.cmpi ne, %11, %c0_i32_9 : i32
    scf.if %12 {
      %c0_10 = arith.constant 0 : index
      %c0_11 = arith.constant 0 : index
      %13 = vector.load %arg2[%c0_10, %c0_11] : memref<2x32xf32, #tpu.memory_space<vmem>>, vector<2x32xf32>
      %c0_12 = arith.constant 0 : index
      %c0_13 = arith.constant 0 : index
      %14 = vector.load %arg3[%c0_12, %c0_13] : memref<2x32xf32, #tpu.memory_space<vmem>>, vector<2x32xf32>
      %cst = arith.constant 1.000000e+00 : f32
      %15 = vector.broadcast %cst : f32 to vector<2x32xf32>
      %16 = arith.addf %15, %14 : vector<2x32xf32>
      %17 = arith.mulf %13, %13 : vector<2x32xf32>
      %18 = arith.subf %16, %17 : vector<2x32xf32>
      %19 = math.exp %14 : vector<2x32xf32>
      %20 = arith.subf %18, %19 : vector<2x32xf32>
      %21 = vector.shape_cast %20 : vector<2x32xf32> to vector<1x2x32xf32>
      %cst_14 = arith.constant dense<0.000000e+00> : vector<1xf32>
      %22 = vector.multi_reduction <add>, %21, %cst_14 [1, 2] : vector<1x2x32xf32> to vector<1xf32>
      %23 = vector.shape_cast %22 : vector<1xf32> to vector<1x1x1xf32>
      %24 = vector.extract %23[0, 0, 0] : f32 from vector<1x1x1xf32>
      %cst_15 = arith.constant -5.000000e-01 : f32
      %25 = arith.mulf %cst_15, %24 : f32
      %c0_16 = arith.constant 0 : index
      %c0_17 = arith.constant 0 : index
      %26 = memref.load %arg6[%c0_16, %c0_17] : memref<1x1xf32, #tpu.memory_space<smem>>
      memref.store %25, %arg6[%c0_16, %c0_17] : memref<1x1xf32, #tpu.memory_space<smem>>
      %c0_18 = arith.constant 0 : index
      %c0_19 = arith.constant 0 : index
      %27 = vector.load %arg8[%c0_18, %c0_19] : memref<4x512xf32, #tpu.memory_space<vmem>>, vector<4x512xf32>
      %28 = vector.shape_cast %27 : vector<4x512xf32> to vector<1x4x512xf32>
      %cst_20 = arith.constant dense<0.000000e+00> : vector<1xf32>
      %29 = vector.multi_reduction <add>, %28, %cst_20 [1, 2] : vector<1x4x512xf32> to vector<1xf32>
      %30 = vector.shape_cast %29 : vector<1xf32> to vector<1x1x1xf32>
      %31 = vector.extract %30[0, 0, 0] : f32 from vector<1x1x1xf32>
      %c0_21 = arith.constant 0 : index
      %c0_22 = arith.constant 0 : index
      %32 = memref.load %arg7[%c0_21, %c0_22] : memref<1x1xf32, #tpu.memory_space<smem>>
      memref.store %31, %arg7[%c0_21, %c0_22] : memref<1x1xf32, #tpu.memory_space<smem>>
    } else {
    }
    return
  }
  func.func @transform_0(%arg0: i32, %arg1: i32) -> (i32, i32) {
    %c0_i32 = arith.constant 0 : i32
    %c0_i32_0 = arith.constant 0 : i32
    %c0_i32_1 = arith.constant 0 : i32
    return %c0_i32, %c0_i32_0 : i32, i32
  }
  func.func @transform_1(%arg0: i32, %arg1: i32) -> (i32, i32) {
    %c0_i32 = arith.constant 0 : i32
    %c0_i32_0 = arith.constant 0 : i32
    %c0_i32_1 = arith.constant 0 : i32
    return %c0_i32, %c0_i32_0 : i32, i32
  }
  func.func @transform_2(%arg0: i32, %arg1: i32) -> (i32, i32) {
    %c1_i32 = arith.constant 1 : i32
    %0 = arith.muli %arg0, %c1_i32 : i32
    %1 = arith.addi %0, %arg1 : i32
    %c0_i32 = arith.constant 0 : i32
    %2 = arith.minsi %1, %c0_i32 : i32
    %c0_i32_0 = arith.constant 0 : i32
    %c0_i32_1 = arith.constant 0 : i32
    return %2, %c0_i32_0 : i32, i32
  }
  func.func @transform_3(%arg0: i32, %arg1: i32) -> (i32, i32) {
    %c1_i32 = arith.constant 1 : i32
    %0 = arith.muli %arg0, %c1_i32 : i32
    %1 = arith.addi %0, %arg1 : i32
    %c0_i32 = arith.constant 0 : i32
    %2 = arith.minsi %1, %c0_i32 : i32
    %c0_i32_0 = arith.constant 0 : i32
    %c0_i32_1 = arith.constant 0 : i32
    return %2, %c0_i32_0 : i32, i32
  }
  func.func @transform_4(%arg0: i32, %arg1: i32) -> (i32, i32) {
    %c0_i32 = arith.constant 0 : i32
    %c0_i32_0 = arith.constant 0 : i32
    return %arg0, %c0_i32 : i32, i32
  }
  func.func @transform_5(%arg0: i32, %arg1: i32) -> (i32, i32) {
    %c0_i32 = arith.constant 0 : i32
    %c0_i32_0 = arith.constant 0 : i32
    return %arg0, %c0_i32 : i32, i32
  }
}

</mosaic_0001>

<bundles_post_ra>
// kernel: tpu_custom_call.1
= control target key start
LH: loop header
LB: loop body
LE: loop exit
PB: predicated region body
PF: predicated region fallthrough
CT: control target
= control target key end

     0   :  { %11 = vsyncpa [#allocation4], 0  ;;  %s405_s0 = inlined_call_operand.hbm [shape: f32[2,32], index: 0, kind: input, shape index: {}]   ;;  %s406_s1 = inlined_call_operand.hbm [shape: f32[2,32], index: 1, kind: input, shape index: {}]   ;;  %s407_s2 = inlined_call_operand.hbm [shape: f32[4,512], index: 2, kind: input, shape index: {}]   ;;  %s408_s3 = inlined_call_operand.hbm [shape: f32[4,512], index: 3, kind: input, shape index: {}]   ;;  %s409_s4 = inlined_call_operand.hbm [shape: f32[1,1], index: 4, kind: output, shape index: {0}]   ;;  %s410_s5 = inlined_call_operand.hbm [shape: f32[1,1], index: 5, kind: output, shape index: {1}]  }
   0x1   :  { %12 = vsyncpa [#allocation7], 0 }
   0x2   :  { %13 = vsyncpa [#allocation10], 0 }
   0x3   :  { %14 = vsyncpa [#allocation5], 0  ;;  %s32_s20 = sshll.u32 %s406_s1, 4  ;;  %s33_s20 = int_to_ptr.hbm [resolvable:$true] %s32_s20 }
   0x4   :  { %15 = vsyncpa [#allocation13], 0  ;;  %s351_s21 = smov [#allocation6]   ;;  %s21_s25 = sshll.u32 %s405_s0, 4  ;;  %s22_s25 = int_to_ptr.hbm [resolvable:$true] %s21_s25 }
   0x5   :  { %s34_s22 = sshll.u32 %s351_s21, 4  ;;  %s352_s26 = smov [#allocation3]   ;;  %s35_s22 = int_to_ptr.vmem [resolvable:$true] %s34_s22 }
   0x6   :  { %37 = dma.hbm_to_vmem [thread:$0]  %s33_s20, 32, %s35_s22, [#allocation7]  }
   0x7   :  { %s23_s27 = sshll.u32 %s352_s26, 4  ;;  %s49_s30 = sshll.u32 %s407_s2, 4  ;;  %s24_s27 = int_to_ptr.vmem [resolvable:$true] %s23_s27  ;;  %s50_s30 = int_to_ptr.hbm [resolvable:$true] %s49_s30 }
   0x8   :  { %26 = dma.hbm_to_vmem [thread:$0]  %s22_s25, 32, %s24_s27, [#allocation4]  }
   0x9   :  { %s66_s7 = sshll.u32 %s408_s3, 4  ;;  %s353_s8 = smov [#allocation8]   ;;  %s67_s7 = int_to_ptr.hbm [resolvable:$true] %s66_s7 }
   0xa   :  { %s51_s9 = sshll.u32 %s353_s8, 4  ;;  %s354_s0 = smov [#allocation9]   ;;  %s52_s9 = int_to_ptr.vmem [resolvable:$true] %s51_s9 }
   0xb   :  { %54 = dma.hbm_to_vmem [thread:$0]  %s50_s30, 256, %s52_s9, [#allocation7]  }
   0xc   :  { %s68_s10 = sshll.u32 %s354_s0, 4  ;;  %s69_s10 = int_to_ptr.vmem [resolvable:$true] %s68_s10 }
   0xd   :  { %71 = dma.hbm_to_vmem [thread:$0]  %s67_s7, 256, %s69_s10, [#allocation10]  }
   0xe   :  { %341 = dma.done.wait [#allocation4], 32  }
   0xf   :  { %342 = vsyncadd [#allocation4], 4294967264 }
  0x10   :  { %343 = dma.done.wait [#allocation7], 288  }
  0x11   :  { %344 = vsyncadd [#allocation7], 4294967008 }
  0x12   :  { %345 = dma.done.wait [#allocation10], 256  }
  0x13   :  { %346 = vsyncadd [#allocation10], 4294967040  ;;  %v117_v0 = vld [vmem:[#allocation3] sm:$0x3]  ;;  %v118_v1 = vld [vmem:[#allocation6] sm:$0x3] }
  0x14   :  { %v100_v2 = vld [vmem:[#allocation8] sm:$0xff]  ;;  %v122_v3 = vmul.f32 1.442695, %v118_v1  ;;  %v101_v4 = vld [vmem:[#allocation8 + $0x8] sm:$0xff]  ;;  %v102_v5 = vld [vmem:[#allocation9] sm:$0xff]  ;;  %v119_v7 = vadd.f32 1.0, %v118_v1  ;;  %v120_v8 = vmul.f32 %v117_v0, %v117_v0 }
  0x15   :  { %v103_v6 = vld [vmem:[#allocation9 + $0x8] sm:$0xff]  ;;  %v104_v9 = vsub.f32 %v100_v2, %v102_v5  ;;  %vm125_vm0 = vcmask 254976   ;;  %vm154_vm1 = vcmask 1043456   ;;  %s178_s11 = sshll.u32 %s409_s4, 4  ;;  %s355_s14 = smov [#allocation11]   ;;  %s179_s11 = int_to_ptr.hbm [resolvable:$true] %s178_s11 }
  0x16   :  { %v105_v10 = vsub.f32 %v101_v4, %v103_v6  ;;  %219 = vpow2.f32 %v122_v3  ;;  %v121_v13 = vsub.f32 %v119_v7, %v120_v8  ;;  %s187_s17 = sshll.u32 %s410_s5, 4  ;;  %s356_s19 = smov [#allocation12]   ;;  %s188_s17 = int_to_ptr.hbm [resolvable:$true] %s187_s17 }
  0x17   :  { %v106_v11 = vmul.f32 %v104_v9, %v104_v9 }
  0x18   :  { %v107_v12 = vmul.f32 %v105_v10, %v105_v10 }
  0x19   :  { %143 = vst [vmem:[#allocation1] ss:$2 sm:$0xff] %v106_v11 }
  0x1a   :  { %145 = vst [vmem:[#allocation1 + $0x10] ss:$2 sm:$0xff] %v107_v12 }
  0x1c   :  { %v220_v14 = vpop.eup %219 }
  0x1d   :  { %v124_v15 = vsub.f32 %v121_v13, %v220_v14 }
  0x1f   :  { %v126_v16 = vsel %vm125_vm0, %v124_v15, 0.0 }
  0x20   :  { %127 = vadd.xlane.f32.xlu0 %v126_v16  ;;  %v146_v17 = vld.sshfl [vmem:[#allocation1] sm:$0xff pattern:$0x75316420]  ;;  %v147_v18 = vld.sshfl [vmem:[#allocation1 + $0x8] sm:$0xff pattern:$0x75316420] }
  0x21   :  { %v148_v19 = vld.sshfl [vmem:[#allocation1 + $0x10] sm:$0xff pattern:$0x75316420]  ;;  %v149_v20 = vld.sshfl [vmem:[#allocation1 + $0x18] sm:$0xff pattern:$0x75316420] }
  0x22   :  { %v155_v21 = vsel %vm154_vm1, %v146_v17, 0.0  ;;  %v156_v22 = vsel %vm154_vm1, %v147_v18, 0.0  ;;  %v158_v23 = vsel %vm154_vm1, %v148_v19, 0.0  ;;  %v160_v25 = vsel %vm154_vm1, %v149_v20, 0.0 }
  0x23   :  { %v157_v24 = vadd.f32 %v156_v22, %v155_v21 }
  0x25   :  { %v159_v26 = vadd.f32 %v158_v23, %v157_v24 }
  0x27   :  { %v161_v27 = vadd.f32 %v160_v25, %v159_v26 }
  0x29   :  { %162 = vadd.xlane.f32.xlu0 %v161_v27 }
  0x93   :  { %v128_v28 = vpop.xlane.xlu0 %127 }
  0x94   :  { %v129_v29 = vrot.slane %v128_v28, 4 }
  0x96   :  { %v130_v30 = vadd.f32 %v129_v29, %v128_v28 }
  0x98   :  { %v131_v31 = vrot.slane %v130_v30, 2 }
  0x9a   :  { %v132_v32 = vadd.f32 %v131_v31, %v130_v30 }
  0x9c   :  { %v163_v33 = vpop.xlane.xlu0 %162  ;;  %v133_v34 = vrot.slane %v132_v32, 1 }
  0x9d   :  { %v164_v35 = vrot.slane %v163_v33, 4 }
  0x9e   :  { %v134_v36 = vadd.f32 %v133_v34, %v132_v32 }
  0x9f   :  { %v165_v37 = vadd.f32 %v164_v35, %v163_v33 }
  0xa0   :  { %209 = vpush %v134_v36 }
  0xa1   :  { %v166_v38 = vrot.slane %v165_v37, 2 }
  0xa3   :  { %v167_v39 = vadd.f32 %v166_v38, %v165_v37 }
  0xa5   :  { %v168_v40 = vrot.slane %v167_v39, 1 }
  0xa7   :  { %v169_v41 = vadd.f32 %v168_v40, %v167_v39 }
  0xa9   :  { %211 = vpush %v169_v41 }
  0xd1   :  { %s210_s12 = spop %209 }
  0xd2   :  { %s136_s13 = smul.f32 -0.5, %s210_s12 }
  0xd4   :  { %138 = sst [smem:[#allocation11]] %s136_s13 }
  0xd5   :  { %181 = dma.smem_to_hbm %s355_s14, 16, %s179_s11, [#allocation5]  }
  0xda   :  { %s212_s18 = spop %211 }
  0xdb   :  { %172 = sst [smem:[#allocation12]] %s212_s18 }
  0xdc   :  { %190 = dma.smem_to_hbm %s356_s19, 16, %s188_s17, [#allocation13]  }
  0xdd   :  { %347 = dma.done.wait [#allocation5], 16  }
  0xde   :  { %348 = vsyncadd [#allocation5], 4294967280 }
  0xdf   :  { %349 = dma.done.wait [#allocation13], 16  }
  0xe0   :  { %350 = vsyncadd [#allocation13], 4294967280 }
  0xe1   :  { %199 = sfence }
  0xe2   :  { %200 = vsyncpa [#allocation4], 1 }
  0xe3   :  { %201 = vsyncpa [#allocation7], 1 }
  0xe4   :  { %202 = vsyncpa [#allocation10], 1 }
  0xe5   :  { %203 = vsyncpa [#allocation5], 1 }
  0xe6   :  { %204 = vsyncpa [#allocation13], 1 }

</bundles_post_ra>
